<compile_context>
chip_gen: v5e
topology: v5e:2x2
jax: 0.10.0
libtpu: 0.0.40
codegen_flags: <defaults>
</compile_context>

<pallas_src>
import functools

import jax
import jax.numpy as jnp
from jax.experimental import pallas as pl
from jax.experimental.pallas import tpu as pltpu


def _round_up(n: int, m: int) -> int:
    return ((n + m - 1) // m) * m


def _chip_kind() -> str:
    try:
        return jax.devices()[0].device_kind.lower()
    except Exception:
        return ""


def _vmem_budget_bytes() -> int:
    """Per-core VMEM capacity minus ~8 MiB headroom (v5e/v6e: 128 MiB, v7x: 64 MiB)."""
    cap = 64 << 20  # conservative fallback = smallest (v7x) capacity
    try:
        cap = int(getattr(pltpu.get_tpu_info(), "vmem_capacity_bytes", cap))
    except Exception:
        pass
    return max(cap - (8 << 20), 16 << 20)


def _vpu_has_bf16() -> bool:
    # v6e/v7x VPUs have bf16 VALUs; v5e and older do not.
    kind = _chip_kind()
    return not any(t in kind for t in ("v2", "v3", "v4", "v5"))


def _num_tensorcores() -> int:
    kind = _chip_kind()
    return 2 if ("v7" in kind or "7x" in kind) else 1


def _bilinear_kernel(x_ref, y_ref, w_ref, b_ref, o_ref, *, repeat_y: bool):
    """Computes one (tile_b, tile_o) output tile.

    x_ref: (tb, in1)           y_ref: (tb, in2)
    w_ref: (K, tile_o)  K=in1*in2   b_ref: (1, tile_o)   o_ref: (tb, tile_o)
    """
    x = x_ref[...]
    y = y_ref[...]
    in1 = x.shape[1]
    in2 = y.shape[1]

    # 2-D lane-dense outer product: one factor is a pure lane concat (jnp.tile),
    # the other a repeat.  We always repeat along the LARGER feature dim so the
    # repeat's broadcast intermediate has lane width max(in1,in2) (least lane
    # padding / relayout), and the elementwise multiply runs fully lane-dense.
    if repeat_y:
        # K ordering: k = j*in1 + i  (weight pre-permuted to match).
        a = jnp.tile(x, (1, in2))          # z[:, k] <- x[:, k % in1]
        c = jnp.repeat(y, in1, axis=1)     # z[:, k] <- y[:, k // in1]
    else:
        # K ordering: k = i*in2 + j.
        a = jnp.repeat(x, in2, axis=1)
        c = jnp.tile(y, (1, in1))
    z = (a * c).astype(w_ref.dtype)

    # Canonical (M, K) @ (K, N) MXU matmul against the pre-transposed weight
    # slab; f32 accumulation regardless of the MXU input dtype.
    acc = jnp.dot(z, w_ref[...], preferred_element_type=jnp.float32)
    acc = acc + b_ref[...].astype(jnp.float32)
    o_ref[...] = acc.astype(o_ref.dtype)


def bilinear_forward(
    x,
    y,
    weight,
    bias=None,
    *,
    tile_b=256,
    tile_o=None,
    mxu_dtype=None,
    vmem_limit_bytes=None,
):
    """x: (B, in1), y: (B, in2), weight: (out, in1, in2), bias: (out,) or None.

    mxu_dtype=jnp.bfloat16 is recommended on v6e/v7x (f32 accumulation is kept);
    the default keeps the operand dtype for torch.nn.Bilinear-equivalent output.
    """
    B, in1 = x.shape
    B2, in2 = y.shape
    assert B == B2, "x and y must share the batch dimension"
    out_f = weight.shape[0]
    assert weight.shape == (out_f, in1, in2)
    K = in1 * in2

    out_dtype = x.dtype
    w_dtype = jnp.dtype(mxu_dtype) if mxu_dtype is not None else jnp.dtype(weight.dtype)
    w_item = w_dtype.itemsize

    # bf16 path: on chips with bf16 VALUs cast x/y BEFORE the outer-product
    # multiply (halves VPU work + z vreg/VMEM); on v5e keep the multiply in f32
    # and cast only z (VPU has no bf16 VALU there).
    cast_inputs_early = (w_dtype == jnp.dtype(jnp.bfloat16)) and _vpu_has_bf16()
    in_dtype = jnp.bfloat16 if cast_inputs_early else x.dtype
    x_item = jnp.dtype(in_dtype).itemsize
    out_item = jnp.dtype(out_dtype).itemsize

    budget = _vmem_budget_bytes()

    # ---- out-axis tiling -----------------------------------------------------
    out_pad_full = _round_up(out_f, 128)

    def _w_bufs(to):
        # Large weight blocks are single-buffered (their block index only
        # changes on the outer grid axis); small ones keep double buffering.
        return 1 if to * K * w_item > (4 << 20) else 2

    if tile_o is None:
        # Collapse the out axis to one tile when the whole padded weight fits
        # comfortably -> z is computed once per batch tile, weight streams once.
        tile_o = out_pad_full if 2 * out_pad_full * K * w_item <= budget // 3 else 256
    tile_o = _round_up(max(128, min(int(tile_o), out_pad_full)), 128)
    while tile_o > 128 and _w_bufs(tile_o) * tile_o * K * w_item > budget // 3:
        tile_o = _round_up(tile_o // 2, 128)
    out_pad = _round_up(out_f, tile_o)

    # ---- batch tiling (sublane multiple; 16 for bf16 inputs) ------------------
    b_mult = 16 if x_item == 2 else 8
    tile_b = max(b_mult, min(int(tile_b), _round_up(B, b_mult)))
    tile_b = _round_up(tile_b, b_mult)

    inner = max(in1, in2)
    outer = min(in1, in2)

    def _footprint(tb):
        wgt = _w_bufs(tile_o) * tile_o * K * w_item              # weight buffers
        xy = 2 * tb * (in1 + in2) * x_item                       # x/y double-buffered
        ob = 2 * tb * tile_o * out_item                          # output double-buffered
        zb = tb * K * (x_item + w_item)                          # product + cast z
        interm = 2 * tb * outer * _round_up(inner, 128) * x_item  # lane-padded repeat/tile temps
        acc = tb * tile_o * 4
        return wgt + xy + ob + zb + interm + acc + (2 << 20)

    while tile_b > b_mult and _footprint(tile_b) > budget:
        tile_b = _round_up(tile_b // 2, b_mult)

    B_pad = _round_up(B, tile_b)

    # v7x has 2 TensorCores: never leave one idle on a 1x1 grid.
    if (out_pad // tile_o == 1 and B_pad // tile_b == 1
            and B_pad >= 2 * b_mult and _num_tensorcores() >= 2):
        tile_b = _round_up(max(b_mult, B_pad // 2), b_mult)
        B_pad = _round_up(B, tile_b)

    # ---- operand layout --------------------------------------------------------
    # Pre-transposed weight slab (K, out_pad): canonical (M,K)@(K,N) MXU shape,
    # no in-kernel RHS transpose.  The K ordering matches the kernel's
    # repeat/tile choice (repeat the operand whose repeat count is larger).
    # TODO(synk): hoist this transpose/cast/pad (and bias pad) to init time for
    #             inference with fixed weights.
    repeat_y = in1 >= in2
    perm = (2, 1, 0) if repeat_y else (1, 2, 0)
    wk = jnp.transpose(weight, perm).reshape(K, out_f).astype(w_dtype)
    if out_pad != out_f:
        wk = jnp.pad(wk, ((0, 0), (0, out_pad - out_f)))

    if bias is None:
        b2d = jnp.zeros((1, out_pad), jnp.float32)
    else:
        b2d = jnp.pad(bias.astype(jnp.float32), (0, out_pad - out_f)).reshape(1, out_pad)

    xp = x.astype(in_dtype)
    yp = y.astype(in_dtype)
    if B_pad != B:
        xp = jnp.pad(xp, ((0, B_pad - B), (0, 0)))
        yp = jnp.pad(yp, ((0, B_pad - B), (0, 0)))

    # ---- scoped VMEM budget (generation aware) --------------------------------
    if vmem_limit_bytes is None:
        need = _footprint(tile_b)
        # v5e's default scoped budget is only 16 MiB; raise the limit whenever we
        # might exceed it, capped at physical capacity minus headroom (v7x: 56 MiB).
        if need > (16 << 20):
            vmem_limit_bytes = int(min(max(need, 32 << 20), budget))

    # ---- grid & specs ----------------------------------------------------------
    def _w_idx(jo, ib):
        return (0, jo)

    if _w_bufs(tile_o) == 1:
        try:
            w_spec = pl.BlockSpec((K, tile_o), _w_idx, pipeline_mode=pl.Buffered(1))
        except TypeError:  # older jax without pipeline_mode on BlockSpec
            w_spec = pl.BlockSpec((K, tile_o), _w_idx)
    else:
        w_spec = pl.BlockSpec((K, tile_o), _w_idx)

    # Grid: out chunks outer, batch chunks inner -> the weight tile stays
    # resident across the whole batch sweep (no redundant weight DMA).
    grid = (out_pad // tile_o, B_pad // tile_b)

    kernel = functools.partial(_bilinear_kernel, repeat_y=repeat_y)

    out_padded = pl.pallas_call(
        kernel,
        out_shape=jax.ShapeDtypeStruct((B_pad, out_pad), out_dtype),
        grid_spec=pltpu.PrefetchScalarGridSpec(
            num_scalar_prefetch=0,
            grid=grid,
            in_specs=[
                pl.BlockSpec((tile_b, in1), lambda jo, ib: (ib, 0)),   # x tile
                pl.BlockSpec((tile_b, in2), lambda jo, ib: (ib, 0)),   # y tile
                w_spec,                                                # (K, tile_o) weight slab
                pl.BlockSpec((1, tile_o), lambda jo, ib: (0, jo)),     # bias chunk
            ],
            out_specs=pl.BlockSpec((tile_b, tile_o), lambda jo, ib: (ib, jo)),
        ),
        compiler_params=pltpu.CompilerParams(
            dimension_semantics=("parallel", "parallel"),
            vmem_limit_bytes=vmem_limit_bytes,
        ),
    )(xp, yp, wk, b2d)

    return out_padded[:B, :out_f]


if __name__ == "__main__":
    # Small shapes consistent with the module's forward.
    B, in1, in2, out_f = 16, 32, 16, 8

    key = jax.random.PRNGKey(0)
    kx, ky, kw, kb = jax.random.split(key, 4)

    # Deterministic param init (mirrors torch.nn.Bilinear: U(-1/sqrt(in1), +)).
    bound = 1.0 / jnp.sqrt(jnp.float32(in1))
    weight = jax.random.uniform(kw, (out_f, in1, in2), jnp.float32, -bound, bound)
    bias = jax.random.uniform(kb, (out_f,), jnp.float32, -bound, bound)

    x = jax.random.normal(kx, (B, in1), jnp.float32)
    y = jax.random.normal(ky, (B, in2), jnp.float32)

    ref = jnp.einsum("bi,oij,bj->bo", x, weight, y) + bias

    # f32 path: tight correctness check.
    out = jax.block_until_ready(bilinear_forward(x, y, weight, bias))
    assert out.shape == (B, out_f)
    assert jnp.allclose(out, ref, atol=1e-4, rtol=1e-4)

    # Ragged batch (exercises the batch-padding / grid-split path).
    out_ragged = jax.block_until_ready(bilinear_forward(x[:13], y[:13], weight, bias))
    assert out_ragged.shape == (13, out_f)
    assert jnp.allclose(out_ragged, ref[:13], atol=1e-4, rtol=1e-4)

    # bf16 MXU path (recommended on v6e/v7x): halved weight DMA, f32 accumulation.
    out_bf16 = jax.block_until_ready(
        bilinear_forward(x, y, weight, bias, mxu_dtype=jnp.bfloat16)
    )
    assert out_bf16.shape == (B, out_f)
    assert jnp.allclose(out_bf16, ref, atol=1e-1, rtol=5e-2)

    # No-bias path (torch.nn.Bilinear(bias=False)).
    out_nb = jax.block_until_ready(bilinear_forward(x, y, weight, None))
    assert jnp.allclose(out_nb, ref - bias, atol=1e-4, rtol=1e-4)

    print("KERNEL_OK")
</pallas_src>

<mosaic_0001>
module attributes {stable_mosaic.version = 11 : i64} {
  func.func @_bilinear_kernel(%arg0: i32, %arg1: i32, %arg2: memref<16x32xf32, #tpu.memory_space<vmem>>, %arg3: memref<16x16xf32, #tpu.memory_space<vmem>>, %arg4: memref<512x128xf32, #tpu.memory_space<vmem>>, %arg5: memref<1x128xf32, #tpu.memory_space<vmem>>, %arg6: memref<16x128xf32, #tpu.memory_space<vmem>>) attributes {dimension_semantics = [#tpu.dimension_semantics<parallel>, #tpu.dimension_semantics<parallel>], iteration_bounds = array<i64: 1, 1>, scalar_prefetch = 0 : i64, scratch_operands = 0 : i64, tpu.core_type = #tpu.core_type<tc>, window_params = [{transform_indices = @transform_0, window_bounds = array<i64: 16, 32>}, {transform_indices = @transform_1, window_bounds = array<i64: 16, 16>}, {transform_indices = @transform_2, window_bounds = array<i64: 512, 128>}, {transform_indices = @transform_3, window_bounds = array<i64: 1, 128>}, {transform_indices = @transform_4, window_bounds = array<i64: 16, 128>}]} {
    %c0 = arith.constant 0 : index
    %c0_0 = arith.constant 0 : index
    %0 = vector.load %arg2[%c0, %c0_0] : memref<16x32xf32, #tpu.memory_space<vmem>>, vector<16x32xf32>
    %c0_1 = arith.constant 0 : index
    %c0_2 = arith.constant 0 : index
    %1 = vector.load %arg3[%c0_1, %c0_2] : memref<16x16xf32, #tpu.memory_space<vmem>>, vector<16x16xf32>
    %2 = tpu.concatenate %0, %0, %0, %0, %0, %0, %0, %0, %0, %0, %0, %0, %0, %0, %0, %0 in 1 : vector<16x32xf32>, vector<16x32xf32>, vector<16x32xf32>, vector<16x32xf32>, vector<16x32xf32>, vector<16x32xf32>, vector<16x32xf32>, vector<16x32xf32>, vector<16x32xf32>, vector<16x32xf32>, vector<16x32xf32>, vector<16x32xf32>, vector<16x32xf32>, vector<16x32xf32>, vector<16x32xf32>, vector<16x32xf32> -> vector<16x512xf32>
    %3 = vector.shape_cast %1 : vector<16x16xf32> to vector<16x16x1xf32>
    %4 = vector.broadcast %3 : vector<16x16x1xf32> to vector<16x16x32xf32>
    %5 = vector.shape_cast %4 : vector<16x16x32xf32> to vector<16x512xf32>
    %6 = arith.mulf %2, %5 : vector<16x512xf32>
    %c0_3 = arith.constant 0 : index
    %c0_4 = arith.constant 0 : index
    %7 = vector.load %arg4[%c0_3, %c0_4] : memref<512x128xf32, #tpu.memory_space<vmem>>, vector<512x128xf32>
    %cst = arith.constant dense<0.000000e+00> : vector<16x128xf32>
    %8 = tpu.matmul %6, %7, %cst {dimension_numbers = #tpu.dot_dimension_numbers<[1], [0], [0], [1], [0, 0, 1, 1], [], []>} : vector<16x512xf32>, vector<512x128xf32>, vector<16x128xf32> -> vector<16x128xf32>
    %c0_5 = arith.constant 0 : index
    %c0_6 = arith.constant 0 : index
    %9 = vector.load %arg5[%c0_5, %c0_6] : memref<1x128xf32, #tpu.memory_space<vmem>>, vector<1x128xf32>
    %10 = vector.broadcast %9 : vector<1x128xf32> to vector<16x128xf32>
    %11 = arith.addf %8, %10 : vector<16x128xf32>
    %c0_7 = arith.constant 0 : index
    %c0_8 = arith.constant 0 : index
    %12 = vector.load %arg6[%c0_7, %c0_8] : memref<16x128xf32, #tpu.memory_space<vmem>>, vector<16x128xf32>
    tpu.vector_store %arg6[%c0_7, %c0_8], %11 {strides = array<i32>} : memref<16x128xf32, #tpu.memory_space<vmem>>, vector<16x128xf32>,
    return
  }
  func.func @transform_0(%arg0: i32, %arg1: i32) -> (i32, i32) {
    %c0_i32 = arith.constant 0 : i32
    %c0_i32_0 = arith.constant 0 : i32
    return %arg1, %c0_i32 : i32, i32
  }
  func.func @transform_1(%arg0: i32, %arg1: i32) -> (i32, i32) {
    %c0_i32 = arith.constant 0 : i32
    %c0_i32_0 = arith.constant 0 : i32
    return %arg1, %c0_i32 : i32, i32
  }
  func.func @transform_2(%arg0: i32, %arg1: i32) -> (i32, i32) {
    %c0_i32 = arith.constant 0 : i32
    %c0_i32_0 = arith.constant 0 : i32
    return %c0_i32, %arg0 : i32, i32
  }
  func.func @transform_3(%arg0: i32, %arg1: i32) -> (i32, i32) {
    %c0_i32 = arith.constant 0 : i32
    %c0_i32_0 = arith.constant 0 : i32
    return %c0_i32, %arg0 : i32, i32
  }
  func.func @transform_4(%arg0: i32, %arg1: i32) -> (i32, i32) {
    %c0_i32 = arith.constant 0 : i32
    return %arg1, %arg0 : i32, i32
  }
}

</mosaic_0001>

<bundles_post_ra>
// kernel: tpu_custom_call.1
= control target key start
LH: loop header
LB: loop body
LE: loop exit
PB: predicated region body
PF: predicated region fallthrough
CT: control target
= control target key end

     0   :  { %9 = vsyncpa [#allocation3], 0  ;;  %s1696_s0 = inlined_call_operand.hbm [shape: f32[16,32], index: 0, kind: input, shape index: {}]   ;;  %s1697_s1 = inlined_call_operand.hbm [shape: f32[16,16], index: 1, kind: input, shape index: {}]   ;;  %s1698_s2 = inlined_call_operand.hbm [shape: f32[512,128], index: 2, kind: input, shape index: {}]   ;;  %s1699_s3 = inlined_call_operand.vmem [shape: f32[1,128], index: 3, kind: input, shape index: {}]   ;;  %s1700_s4 = inlined_call_operand.hbm [shape: f32[16,128], index: 4, kind: output, shape index: {}]  }
   0x1   :  { %10 = vsyncpa [#allocation6], 0 }
   0x2   :  { %11 = vsyncpa [#allocation4], 0  ;;  %s29_s17 = sshll.u32 %s1697_s1, 4  ;;  %s1197_s18 = smov [#allocation5]   ;;  %s30_s17 = int_to_ptr.hbm [resolvable:$true] %s29_s17 }
   0x3   :  { %s31_s19 = sshll.u32 %s1197_s18, 4  ;;  %s16_s22 = sshll.u32 %s1696_s0, 4  ;;  %s32_s19 = int_to_ptr.vmem [resolvable:$true] %s31_s19  ;;  %s17_s22 = int_to_ptr.hbm [resolvable:$true] %s16_s22 }
   0x4   :  { %s1198_s23 = smov 128   ;;  %s1199_s24 = smov 8  }
   0x5   :  { %37 = dma.hbm_to_vmem [thread:$0]  %s30_s17, 256, %s32_s19, [#allocation6], %s1198_s23, %s1198_s23, %s1199_s24  }
   0x6   :  { %s1200_s25 = smov [#allocation2]   ;;  %s42_s1 = sshll.u32 %s1698_s2, 4  ;;  %s43_s1 = int_to_ptr.hbm [resolvable:$true] %s42_s1 }
   0x7   :  { %s18_s26 = sshll.u32 %s1200_s25, 4  ;;  %s1201_s0 = smov [#allocation7]   ;;  %s19_s26 = int_to_ptr.vmem [resolvable:$true] %s18_s26 }
   0x8   :  { %24 = dma.hbm_to_vmem [thread:$0]  %s17_s22, 256, %s19_s26, [#allocation3], %s1198_s23, %s1198_s23, %s1199_s24  }
   0x9   :  { %s44_s29 = sshll.u32 %s1201_s0, 4  ;;  %s45_s29 = int_to_ptr.vmem [resolvable:$true] %s44_s29 }
   0xa   :  { %50 = dma.hbm_to_vmem [thread:$0]  %s43_s1, 8192, %s45_s29, [#allocation6], %s1198_s23, %s1198_s23, %s1199_s24  }
   0xb   :  { %1191 = dma.done.wait [#allocation3], 256  }
   0xc   :  { %1192 = vsyncadd [#allocation3], 4294967040 }
   0xd   :  { %1193 = dma.done.wait [#allocation6], 8448  }
   0xe   :  { %1194 = vsyncadd [#allocation6], 4294958848  ;;  %v99_v0 = vlaneseq  ;;  %v1259_v3 = vld [vmem:[#allocation2] sm:$0xff]  ;;  %s1202_s2 = smov 96   ;;  %s1203_s30 = smov 64   ;;  %v1267_v4 = vld [vmem:[#allocation2 + $0x8] sm:$0xff] }
   0xf   :  { %83 = vrot.lane.b32.xlu2 %v1259_v3, %s1202_s2  ;;  %77 = vrot.lane.b32.xlu1 %v1259_v3, %s1203_s30  ;;  %s1204_s5 = smov 32   ;;  %v67_v5 = vld [vmem:[#allocation5] sm:$0xff]  ;;  %v1275_v9 = vld [vmem:[#allocation5 + $0x8] sm:$0xff]  ;;  %vm89_vm0 = vcmask 261120   ;;  %vm92_vm1 = vcmask 523264   ;;  %vm95_vm2 = vcmask 785408  }
  0x10   :  { %v1251_v1 = vshrl.u32 %v99_v0, 7  ;;  %71 = vrot.lane.b32.xlu0 %v1259_v3, %s1204_s5  ;;  %v111_v6 = vperm.slane %v67_v5, 1  ;;  %v98_v7 = vperm.slane %v67_v5, 0  ;;  %v176_v8 = vperm.slane %v67_v5, 6  ;;  %s1207_s8 = smov [#allocation8]  }
  0x11   :  { %v215_v10 = vperm.slane %v1275_v9, 1  ;;  %v137_v11 = vperm.slane %v67_v5, 3  ;;  %v124_v12 = vperm.slane %v67_v5, 2  ;;  %v189_v13 = vperm.slane %v67_v5, 7  ;;  %s1049_s9 = sshll.u32 %s1207_s8, 4  ;;  %s1050_s9 = int_to_ptr.vmem [resolvable:$true] %s1049_s9 }
  0x12   :  { %1077 = vset.pattern.permute.xlu2 %v1251_v1  ;;  %v1255_v2 = vadd.s32 8, %v1251_v1  ;;  %v163_v14 = vperm.slane %v67_v5, 5  ;;  %v150_v15 = vperm.slane %v67_v5, 4  ;;  %v280_v16 = vperm.slane %v1275_v9, 6 }
  0x13   :  { %v293_v17 = vperm.slane %v1275_v9, 7  ;;  %v241_v18 = vperm.slane %v1275_v9, 3  ;;  %v267_v19 = vperm.slane %v1275_v9, 5  ;;  %v228_v20 = vperm.slane %v1275_v9, 2 }
  0x14   :  { %1076 = vset.pattern.permute.xlu1 %v1255_v2  ;;  %1079 = vset.pattern.permute.xlu0 %v1255_v2  ;;  %v202_v21 = vperm.slane %v1275_v9, 0  ;;  %v254_v32 = vperm.slane %v1275_v9, 4  ;;  %v1205_v42 = vmov 1983009808   ;;  %vm307_vm3 = vcmask 1047556  }
  0x15   :  { %v312_v43 = vunpack.c.l.s4 %v1205_v42  ;;  %v1206_v57 = vmov 1934713408  }
  0x16   :  { %v360_v58 = vunpack.c.l.s4 %v1206_v57 }
  0x17   :  { %85 = vrot.lane.b32.xlu2 %v1267_v4, %s1202_s2  ;;  %79 = vrot.lane.b32.xlu1 %v1267_v4, %s1203_s30  ;;  %v1322_v47 = vunpack.c.0.s8 %v312_v43 }
  0x18   :  { %73 = vrot.lane.b32.xlu0 %v1267_v4, %s1204_s5 }
  0x1f   :  { %116 = vperm.xlu2 %1077, %v111_v6   ;;  %109 = vperm.xlu1 %1076, %v98_v7  }
  0x20   :  { %187 = vperm.xlu0 %1079, %v176_v8  }
  0x27   :  { %1078 = vset.pattern.permute.xlu2 %v1255_v2  ;;  %122 = vperm.xlu1 %1076, %v111_v6  }
  0x28   :  { %226 = vperm.xlu0 %1079, %v215_v10  }
  0x2f   :  { %148 = vperm.xlu2 %1078, %v137_v11   ;;  %135 = vperm.xlu1 %1076, %v124_v12  }
  0x30   :  { %1086 = vset.pattern.permute.xlu0 %v1251_v1 }
  0x37   :  { %1080 = vset.pattern.permute.xlu2 %v1251_v1  ;;  %200 = vperm.xlu1 %1076, %v189_v13  }
  0x38   :  { %103 = vperm.xlu0 %1086, %v98_v7  }
  0x3f   :  { %142 = vperm.xlu2 %1080, %v137_v11   ;;  %1082 = vset.pattern.permute.xlu1 %v1251_v1 }
  0x40   :  { %181 = vperm.xlu0 %1086, %v176_v8  }
  0x47   :  { %1081 = vset.pattern.permute.xlu2 %v1255_v2  ;;  %129 = vperm.xlu1 %1082, %v124_v12  }
  0x48   :  { %168 = vperm.xlu0 %1086, %v163_v14  }
  0x4f   :  { %161 = vperm.xlu2 %1081, %v150_v15   ;;  %194 = vperm.xlu1 %1082, %v189_v13  }
  0x50   :  { %285 = vperm.xlu0 %1086, %v280_v16  }
  0x57   :  { %174 = vperm.xlu2 %1081, %v163_v14   ;;  %1084 = vset.pattern.permute.xlu1 %v1255_v2 }
  0x58   :  { %298 = vperm.xlu0 %1086, %v293_v17  }
  0x5f   :  { %1083 = vset.pattern.permute.xlu2 %v1251_v1  ;;  %252 = vperm.xlu1 %1084, %v241_v18  }
  0x60   :  { %272 = vperm.xlu0 %1086, %v267_v19  }
  0x67   :  { %155 = vperm.xlu2 %1083, %v150_v15   ;;  %239 = vperm.xlu1 %1084, %v228_v20  }
  0x68   :  { %1093 = vset.pattern.permute.xlu0 %v1255_v2 }
  0x69   :  { %v84_v22 = vpop.permute.xlu2 %83 }
  0x6f   :  { %1085 = vset.pattern.permute.xlu2 %v1255_v2  ;;  %304 = vperm.xlu1 %1084, %v293_v17  }
  0x71   :  { %v86_v28 = vpop.permute.xlu2 %85 }
  0x77   :  { %291 = vperm.xlu2 %1085, %v280_v16   ;;  %213 = vperm.xlu1 %1084, %v202_v21  }
  0x79   :  { %v1315_v35 = vpop.permute.xlu2 %116 }
  0x7f   :  { %1087 = vset.pattern.permute.xlu2 %v1251_v1  ;;  %1090 = vset.pattern.permute.xlu1 %v1251_v1 }
  0x81   :  { %v78_v23 = vpop.permute.xlu1 %77 }
  0x82   :  { %v72_v24 = vpop.permute.xlu0 %71 }
  0x83   :  { %v90_v25 = vsel %vm89_vm0, %v1259_v3, %v72_v24 }
  0x84   :  { %v93_v26 = vsel %vm92_vm1, %v90_v25, %v78_v23 }
  0x85   :  { %v1305_v27 = vsel %vm95_vm2, %v93_v26, %v84_v22 }
  0x87   :  { %246 = vperm.xlu2 %1087, %v241_v18   ;;  %233 = vperm.xlu1 %1090, %v228_v20  }
  0x89   :  { %v80_v29 = vpop.permute.xlu1 %79  ;;  %v149_v38 = vpop.permute.xlu2 %148 }
  0x8a   :  { %v74_v30 = vpop.permute.xlu0 %73  ;;  %v543_v45 = vrot.slane %v149_v38, 4 }
  0x8b   :  { %v91_v31 = vsel %vm89_vm0, %v1267_v4, %v74_v30  ;;  %v1335_v4 = vunpack.c.0.s8 %v360_v58 }
  0x8c   :  { %v94_v33 = vsel %vm92_vm1, %v91_v31, %v80_v29 }
  0x8d   :  { %v1312_v34 = vsel %vm95_vm2, %v94_v33, %v86_v28  ;;  %v321_v33 = vrot.slane %v1315_v35, 4 }
  0x8f   :  { %1088 = vset.pattern.permute.xlu2 %v1255_v2  ;;  %259 = vperm.xlu1 %1090, %v254_v32  }
  0x91   :  { %v110_v36 = vpop.permute.xlu1 %109 }
  0x92   :  { %v188_v37 = vpop.permute.xlu0 %187  ;;  %v533_v59 = vrot.slane %v110_v36, 4 }
  0x93   :  { %v555_v55 = vrot.slane %v188_v37, 4 }
  0x97   :  { %265 = vperm.xlu2 %1088, %v254_v32  }
  0x99   :  { %v123_v39 = vpop.permute.xlu1 %122  ;;  %v1320_v41 = vpop.permute.xlu2 %142 }
  0x9a   :  { %v1318_v40 = vpop.permute.xlu0 %226  ;;  %v544_v48 = vsel %vm307_vm3, %v543_v45, %v123_v39  ;;  %v545_v54 = vrot.slane %v123_v39, 4  ;;  %v319_v6 = vrot.slane %v1320_v41, 4 }
  0x9b   :  { %v550_v52 = vperm.slane %v544_v48, %v1322_v47 }
  0x9c   :  { %v546_v62 = vsel %vm307_vm3, %v149_v38, %v545_v54  ;;  %v320_v23 = vsel %vm307_vm3, %v319_v6, %v1315_v35 }
  0x9d   :  { %v579_v61 = vrot.slane %v550_v52, 4  ;;  %v326_v45 = vperm.slane %v320_v23, %v1322_v47 }
  0x9f   :  { %1089 = vset.pattern.permute.xlu2 %v1251_v1 }
  0xa1   :  { %v136_v44 = vpop.permute.xlu1 %135 }
  0xa2   :  { %v531_v46 = vrot.slane %v136_v44, 4  ;;  %v534_v7 = vsel %vm307_vm3, %v136_v44, %v533_v59  ;;  %v322_v44 = vsel %vm307_vm3, %v1320_v41, %v321_v33 }
  0xa3   :  { %v542_v18 = vperm.slane %v534_v7, %v1322_v47 }
  0xa4   :  { %v532_v50 = vsel %vm307_vm3, %v531_v46, %v110_v36 }
  0xa5   :  { %v538_v56 = vperm.slane %v532_v50, %v1322_v47 }
  0xa7   :  { %220 = vperm.xlu2 %1089, %v215_v10   ;;  %v580_v5 = vsel %vm307_vm3, %v579_v61, %v538_v56  ;;  %v581_v12 = vrot.slane %v538_v56, 4  ;;  %v330_v61 = vperm.slane %v322_v44, %v1322_v47 }
  0xa8   :  { %v586_v17 = vperm.slane %v580_v5, %v1335_v4 }
  0xa9   :  { %v162_v49 = vpop.permute.xlu2 %161  ;;  %v201_v53 = vpop.permute.xlu1 %200  ;;  %v582_v32 = vsel %vm307_vm3, %v550_v52, %v581_v12 }
  0xaa   :  { %v1328_v51 = vpop.permute.xlu0 %103  ;;  %v567_v60 = vrot.slane %v201_v53, 4  ;;  %v557_v63 = vrot.slane %v162_v49, 4  ;;  %v556_v0 = vsel %vm307_vm3, %v555_v55, %v162_v49  ;;  %v629_v31 = vrot.slane %v586_v17, 4 }
  0xab   :  { %v562_v15 = vperm.slane %v556_v0, %v1322_v47  ;;  %v1372_v35 = vperm.slane %v582_v32, %v1335_v4  ;;  %v309_v41 = vrot.slane %v1328_v51, 4  ;;  %v355_v0 = vrot.slane %v326_v45, 4 }
  0xac   :  { %v558_v14 = vsel %vm307_vm3, %v188_v37, %v557_v63 }
  0xad   :  { %v566_v25 = vperm.slane %v558_v14, %v1322_v47  ;;  %v605_v29 = vrot.slane %v562_v15, 4 }
  0xaf   :  { %1091 = vset.pattern.permute.xlu2 %v1255_v2  ;;  %v1344_v2 = vperm.slane %v546_v62, %v1322_v47  ;;  %v617_v48 = vrot.slane %v566_v25, 4 }
  0xb1   :  { %v175_v3 = vpop.permute.xlu2 %174  ;;  %v591_v24 = vrot.slane %v1344_v2, 4 }
  0xb2   :  { %v568_v8 = vsel %vm307_vm3, %v567_v60, %v175_v3  ;;  %v569_v10 = vrot.slane %v175_v3, 4  ;;  %v1341_v11 = vpop.permute.xlu0 %181  ;;  %v593_v60 = vrot.slane %v542_v18, 4 }
  0xb3   :  { %v574_v13 = vperm.slane %v568_v8, %v1322_v47  ;;  %v592_v36 = vsel %vm307_vm3, %v591_v24, %v542_v18  ;;  %v331_v56 = vrot.slane %v1341_v11, 4 }
  0xb4   :  { %v570_v16 = vsel %vm307_vm3, %v201_v53, %v569_v10  ;;  %v1388_v55 = vperm.slane %v592_v36, %v1335_v4 }
  0xb5   :  { %v578_v20 = vperm.slane %v570_v16, %v1322_v47  ;;  %v603_v22 = vrot.slane %v574_v13, 4  ;;  %v594_v16 = vsel %vm307_vm3, %v1344_v2, %v593_v60 }
  0xb7   :  { %v615_v26 = vrot.slane %v578_v20, 4  ;;  %278 = vperm.xlu2 %1091, %v267_v19   ;;  %v604_v28 = vsel %vm307_vm3, %v603_v22, %v562_v15  ;;  %v606_v19 = vsel %vm307_vm3, %v574_v13, %v605_v29  ;;  %v618_v58 = vsel %vm307_vm3, %v578_v20, %v617_v48 }
  0xb8   :  { %v610_v30 = vperm.slane %v604_v28, %v1335_v4  ;;  %v1385_v54 = vperm.slane %v606_v19, %v1335_v4  ;;  %v626_v8 = vperm.slane %v618_v58, %v1335_v4  ;;  %v367_v29 = vrot.slane %v330_v61, 4 }
  0xb9   :  { %v130_v37 = vpop.permute.xlu1 %129  ;;  %v616_v38 = vsel %vm307_vm3, %v615_v26, %v566_v25 }
  0xba   :  { %v306_v39 = vrot.slane %v130_v37, 4  ;;  %v630_v42 = vsel %vm307_vm3, %v610_v30, %v629_v31  ;;  %v627_v43 = vrot.slane %v610_v30, 4  ;;  %v169_v46 = vpop.permute.xlu0 %168  ;;  %v1377_v50 = vperm.slane %v616_v38, %v1335_v4 }
  0xbb   :  { %805 = vrot.lane.b32.xlu1 %v630_v42, %s1204_s5  ;;  %v345_v57 = vrot.slane %v169_v46, 4  ;;  %v310_v3 = vsel %vm307_vm3, %v130_v37, %v309_v41  ;;  %v639_v30 = vrot.slane %v626_v8, 4  ;;  %v602_v37 = vperm.slane %v594_v16, %v1335_v4 }
  0xbc   :  { %v308_v49 = vsel %vm307_vm3, %v306_v39, %v1328_v51  ;;  %v1380_v52 = vsel %vm307_vm3, %v627_v43, %v586_v17  ;;  %v635_v59 = vrot.slane %v1377_v50, 4  ;;  %v633_v51 = vrot.slane %v1372_v35, 4 }
  0xbd   :  { %v314_v53 = vperm.slane %v308_v49, %v1322_v47  ;;  %v318_v18 = vperm.slane %v310_v3, %v1322_v47  ;;  %v640_v43 = vsel %vm307_vm3, %v639_v30, %v602_v37  ;;  %v641_v60 = vrot.slane %v602_v37, 4  ;;  %v946_v37 = vld [vmem:[#allocation7 + $0x1f8] sm:$0xff] }
  0xbe   :  { %v1398_v63 = vsel %vm307_vm3, %v635_v59, %v1388_v55  ;;  %v634_v7 = vsel %vm307_vm3, %v1385_v54, %v633_v51  ;;  %v657_v30 = vrot.slane %v1318_v40, 4  ;;  %1020 = vmatpush.msra.mxu3 %v946_v37  ;;  %v919_v37 = vld [vmem:[#allocation7 + $0x120] sm:$0xff] }
  0xbf   :  { %1092 = vset.pattern.permute.xlu2 %v1251_v1  ;;  %v357_v62 = vrot.slane %v314_v53, 4  ;;  %v356_v17 = vsel %vm307_vm3, %v355_v0, %v314_v53  ;;  %v368_v36 = vsel %vm307_vm3, %v367_v29, %v318_v18  ;;  %v369_v53 = vrot.slane %v318_v18, 4  ;;  %v927_v29 = vld [vmem:[#allocation7 + $0x160] sm:$0xff] }
  0xc0   :  { %v362_v2 = vperm.slane %v356_v17, %v1335_v4  ;;  %v642_v0 = vsel %vm307_vm3, %v626_v8, %v641_v60 }
  0xc1   :  { %v156_v5 = vpop.permute.xlu2 %155  ;;  %v195_v6 = vpop.permute.xlu1 %194  ;;  %v358_v23 = vsel %vm307_vm3, %v326_v45, %v357_v62  ;;  %v374_v45 = vperm.slane %v368_v36, %v1335_v4  ;;  %v370_v62 = vsel %vm307_vm3, %v330_v61, %v369_v53  ;;  %v897_v53 = vld [vmem:[#allocation7 + $0x70] sm:$0xff] }
  0xc2   :  { %v332_v1 = vsel %vm307_vm3, %v331_v56, %v156_v5  ;;  %v333_v10 = vrot.slane %v156_v5, 4  ;;  %v343_v12 = vrot.slane %v195_v6, 4  ;;  %v346_v13 = vsel %vm307_vm3, %v195_v6, %v345_v57 }
  0xc3   :  { %v338_v14 = vperm.slane %v332_v1, %v1322_v47  ;;  %v354_v15 = vperm.slane %v346_v13, %v1322_v47  ;;  %821 = vrot.lane.b32.xlu1 %v634_v7, %s1202_s2  ;;  %v366_v38 = vperm.slane %v358_v23, %v1335_v4  ;;  %v405_v9 = vrot.slane %v362_v2, 4  ;;  %v929_v23 = vld [vmem:[#allocation7 + $0x170] sm:$0xff] }
  0xc4   :  { %v334_v20 = vsel %vm307_vm3, %v1341_v11, %v333_v10  ;;  %v344_v22 = vsel %vm307_vm3, %v343_v12, %v169_v46  ;;  %v378_v6 = vperm.slane %v370_v62, %v1335_v4  ;;  %v413_v1 = vrot.slane %v374_v45, 4 }
  0xc5   :  { %v342_v24 = vperm.slane %v334_v20, %v1322_v47  ;;  %v381_v25 = vrot.slane %v338_v14, 4  ;;  %v350_v26 = vperm.slane %v344_v22, %v1322_v47  ;;  %v391_v28 = vrot.slane %v354_v15, 4  ;;  %v930_v22 = vld [vmem:[#allocation7 + $0x178] sm:$0xff] }
  0xc6   :  { %v409_v41 = vrot.slane %v366_v38, 4  ;;  %v631_v10 = vrot.slane %v1385_v54, 4  ;;  %v417_v13 = vrot.slane %v378_v6, 4  ;;  %997 = vmatpush.msra.mxu2 %v930_v22 }
  0xc7   :  { %v393_v31 = vrot.slane %v342_v24, 4  ;;  %v379_v32 = vrot.slane %v350_v26, 4  ;;  %207 = vperm.xlu2 %1092, %v202_v21   ;;  %v382_v11 = vsel %vm307_vm3, %v350_v26, %v381_v25  ;;  %v392_v33 = vsel %vm307_vm3, %v391_v28, %v342_v24  ;;  %v928_v26 = vld [vmem:[#allocation7 + $0x168] sm:$0xff] }
  0xc8   :  { %v398_v39 = vperm.slane %v392_v33, %v1335_v4  ;;  %v390_v21 = vperm.slane %v382_v11, %v1335_v4  ;;  %v632_v8 = vsel %vm307_vm3, %v631_v10, %v1372_v35  ;;  %v1470_v35 = vpop.permute.xlu0 %285  ;;  %998 = vmatpush.msra.mxu2 %v929_v23  ;;  %v925_v11 = vld [vmem:[#allocation7 + $0x150] sm:$0xff] }
  0xc9   :  { %v380_v42 = vsel %vm307_vm3, %v379_v32, %v338_v14  ;;  %v394_v44 = vsel %vm307_vm3, %v354_v15, %v393_v31  ;;  %v637_v15 = vrot.slane %v1388_v55, 4  ;;  %v921_v10 = vld [vmem:[#allocation7 + $0x130] sm:$0xff] }
  0xca   :  { %v386_v19 = vperm.slane %v380_v42, %v1335_v4  ;;  %v411_v46 = vrot.slane %v398_v39, 4  ;;  %v410_v57 = vsel %vm307_vm3, %v390_v21, %v409_v41  ;;  %v402_v58 = vperm.slane %v394_v44, %v1335_v4  ;;  %999 = vmatpush.msra.mxu2 %v928_v26  ;;  %v944_v41 = vld [vmem:[#allocation7 + $0x1e8] sm:$0xff] }
  0xcb   :  { %837 = vrot.lane.b32.xlu1 %v640_v43, %s1203_s30  ;;  %v407_v51 = vrot.slane %v390_v21, 4  ;;  %v414_v61 = vsel %vm307_vm3, %v398_v39, %v413_v1  ;;  %v638_v54 = vsel %vm307_vm3, %v1377_v50, %v637_v15  ;;  %v924_v39 = vld [vmem:[#allocation7 + $0x148] sm:$0xff] }
  0xcc   :  { %v406_v48 = vsel %vm307_vm3, %v386_v19, %v405_v9  ;;  %v403_v49 = vrot.slane %v386_v19, 4  ;;  %v1438_v56 = vsel %vm307_vm3, %v411_v46, %v374_v45  ;;  %v415_v3 = vrot.slane %v402_v58, 4  ;;  %1000 = vmatpush.msra.mxu2 %v927_v29  ;;  %v898_v9 = vld [vmem:[#allocation7 + $0x78] sm:$0xff]  ;;  %v941_v29 = vld [vmem:[#allocation7 + $0x1d0] sm:$0xff] }
  0xcd   :  { %757 = vrot.lane.b32.xlu0 %v406_v48, %s1204_s5  ;;  %v408_v5 = vsel %vm307_vm3, %v407_v51, %v366_v38  ;;  %v418_v14 = vsel %vm307_vm3, %v402_v58, %v417_v13  ;;  %951 = vmatpush.msra.mxu0 %v898_v9  ;;  %v923_v48 = vld [vmem:[#allocation7 + $0x140] sm:$0xff]  ;;  %v942_v13 = vld [vmem:[#allocation7 + $0x1d8] sm:$0xff] }
  0xce   :  { %v1443_v59 = vsel %vm307_vm3, %v403_v49, %v362_v2  ;;  %v416_v7 = vsel %vm307_vm3, %v415_v3, %v378_v6  ;;  %v926_v2 = vld [vmem:[#allocation7 + $0x158] sm:$0xff]  ;;  %v896_v3 = vld [vmem:[#allocation7 + $0x68] sm:$0xff] }
  0xcf   :  { %773 = vrot.lane.b32.xlu2 %v410_v57, %s1202_s2  ;;  %1001 = vmatpush.msra.mxu2 %v926_v2  ;;  %v922_v57 = vld [vmem:[#allocation7 + $0x138] sm:$0xff] }
  0xd0   :  { %v1476_v25 = vpop.permute.xlu0 %298  ;;  %952 = vmatpush.msra.mxu0 %v897_v53  ;;  %v892_v53 = vld [vmem:[#allocation7 + $0x48] sm:$0xff] }
  0xd1   :  { %v253_v12 = vpop.permute.xlu1 %252  ;;  %v1466_v17 = vpop.permute.xlu2 %291  ;;  %v455_v19 = vrot.slane %v1476_v25, 4  ;;  %1002 = vmatpush.msra.mxu2 %v925_v11 }
  0xd2   :  { %v655_v50 = vrot.slane %v253_v12, 4  ;;  %v667_v38 = vrot.slane %v1466_v17, 4  ;;  %v658_v42 = vsel %vm307_vm3, %v253_v12, %v657_v30  ;;  %953 = vmatpush.msra.mxu0 %v896_v3  ;;  %v894_v30 = vld [vmem:[#allocation7 + $0x58] sm:$0xff] }
  0xd3   :  { %845 = vrot.lane.b32.xlu1 %v642_v0, %s1202_s2  ;;  %1003 = vmatpush.msra.mxu2 %v924_v39  ;;  %v1494_v49 = vperm.slane %v658_v42, %v1322_v47  ;;  %v943_v0 = vld [vmem:[#allocation7 + $0x1e0] sm:$0xff] }
  0xd4   :  { %v656_v31 = vsel %vm307_vm3, %v655_v50, %v1318_v40  ;;  %v945_v40 = vld [vmem:[#allocation7 + $0x1f0] sm:$0xff] }
  0xd5   :  { %765 = vrot.lane.b32.xlu0 %v408_v5, %s1203_s30  ;;  %v662_v43 = vperm.slane %v656_v31, %v1322_v47  ;;  %1021 = vmatpush.msra.mxu3 %v945_v40  ;;  %v703_v15 = vrot.slane %v1494_v49, 4 }
  0xd6   :  { %1004 = vmatpush.msra.mxu2 %v923_v48 }
  0xd7   :  { %789 = vrot.lane.b32.xlu2 %v416_v7, %s1203_s30  ;;  %v691_v58 = vrot.slane %v662_v43, 4  ;;  %1022 = vmatpush.msra.mxu3 %v944_v41 }
  0xd8   :  { %v273_v45 = vpop.permute.xlu0 %272  ;;  %1005 = vmatpush.msra.mxu2 %v922_v57 }
  0xd9   :  { %v240_v16 = vpop.permute.xlu1 %239  ;;  %v456_v60 = vsel %vm307_vm3, %v455_v19, %v273_v45  ;;  %v457_v51 = vrot.slane %v273_v45, 4  ;;  %1023 = vmatpush.msra.mxu3 %v943_v0  ;;  %v940_v19 = vld [vmem:[#allocation7 + $0x1c8] sm:$0xff] }
  0xda   :  { %v643_v28 = vrot.slane %v240_v16, 4  ;;  %1006 = vmatpush.msra.mxu2 %v921_v10 }
  0xdb   :  { %v458_v50 = vsel %vm307_vm3, %v1476_v25, %v457_v51  ;;  %1024 = vmatpush.msra.mxu3 %v942_v13  ;;  %v916_v13 = vld [vmem:[#allocation7 + $0x108] sm:$0xff] }
  0xdd   :  { %781 = vrot.lane.b32.xlu0 %v414_v61, %s1204_s5  ;;  %v443_v61 = vrot.slane %v1470_v35, 4  ;;  %1025 = vmatpush.msra.mxu3 %v941_v29 }
  0xdf   :  { %813 = vrot.lane.b32.xlu2 %v632_v8, %s1203_s30  ;;  %1026 = vmatpush.msra.mxu3 %v940_v19 }
  0xe1   :  { %v1468_v18 = vpop.permute.xlu1 %304  ;;  %v1472_v20 = vpop.permute.xlu2 %246 }
  0xe2   :  { %v679_v5 = vrot.slane %v1468_v18, 4  ;;  %v431_v40 = vrot.slane %v1472_v20, 4 }
  0xe5   :  { %797 = vrot.lane.b32.xlu0 %v418_v14, %s1202_s2  ;;  %v895_v14 = vld [vmem:[#allocation7 + $0x60] sm:$0xff] }
  0xe6   :  { %954 = vmatpush.msra.mxu0 %v895_v14  ;;  %v914_v14 = vld [vmem:[#allocation7 + $0xf8] sm:$0xff] }
  0xe7   :  { %829 = vrot.lane.b32.xlu2 %v638_v54, %s1204_s5  ;;  %v1505_v54 = vperm.slane %v456_v60, %v1322_v47  ;;  %974 = vmatpush.msra.mxu1 %v914_v14 }
  0xe8   :  { %955 = vmatpush.msra.mxu0 %v894_v30  ;;  %v915_v30 = vld [vmem:[#allocation7 + $0x100] sm:$0xff] }
  0xe9   :  { %v214_v55 = vpop.permute.xlu1 %213 }
  0xea   :  { %v644_v33 = vsel %vm307_vm3, %v643_v28, %v214_v55  ;;  %v645_v21 = vrot.slane %v214_v55, 4  ;;  %v920_v55 = vld [vmem:[#allocation7 + $0x128] sm:$0xff] }
  0xeb   :  { %v650_v44 = vperm.slane %v644_v33, %v1322_v47  ;;  %1007 = vmatpush.msra.mxu2 %v920_v55  ;;  %v890_v55 = vld [vmem:[#allocation7 + $0x38] sm:$0xff] }
  0xec   :  { %v646_v6 = vsel %vm307_vm3, %v240_v16, %v645_v21  ;;  %v918_v21 = vld [vmem:[#allocation7 + $0x118] sm:$0xff] }
  0xed   :  { %v693_v7 = vrot.slane %v650_v44, 4  ;;  %v692_v8 = vsel %vm307_vm3, %v691_v58, %v650_v44  ;;  %v939_v44 = vld [vmem:[#allocation7 + $0x1c0] sm:$0xff]  ;;  %1008 = vmatpush.msra.mxu2 %v919_v37 }
  0xee   :  { %v698_v11 = vperm.slane %v692_v8, %v1335_v4  ;;  %1027 = vmatpush.msra.mxu3 %v939_v44  ;;  %v938_v8 = vld [vmem:[#allocation7 + $0x1b8] sm:$0xff] }
  0xef   :  { %v694_v33 = vsel %vm307_vm3, %v662_v43, %v693_v7  ;;  %1009 = vmatpush.msra.mxu2 %v918_v21  ;;  %v935_v21 = vld [vmem:[#allocation7 + $0x1a0] sm:$0xff] }
  0xf0   :  { %v741_v58 = vrot.slane %v698_v11, 4  ;;  %v702_v60 = vperm.slane %v694_v33, %v1335_v4  ;;  %1028 = vmatpush.msra.mxu3 %v938_v8  ;;  %v889_v33 = vld [vmem:[#allocation7 + $0x30] sm:$0xff] }
  0xf1   :  { %v1474_v24 = vpop.permute.xlu2 %265 }
  0xf2   :  { %v668_v46 = vsel %vm307_vm3, %v667_v38, %v1474_v24  ;;  %v669_v1 = vrot.slane %v1474_v24, 4  ;;  %v1509_v24 = vperm.slane %v646_v6, %v1322_v47  ;;  %v917_v6 = vld [vmem:[#allocation7 + $0x110] sm:$0xff] }
  0xf3   :  { %v674_v62 = vperm.slane %v668_v46, %v1322_v47  ;;  %1010 = vmatpush.msra.mxu2 %v917_v6  ;;  %v910_v6 = vld [vmem:[#allocation7 + $0xd8] sm:$0xff] }
  0xf4   :  { %v670_v2 = vsel %vm307_vm3, %v1466_v17, %v669_v1  ;;  %v893_v17 = vld [vmem:[#allocation7 + $0x50] sm:$0xff]  ;;  %v704_v41 = vsel %vm307_vm3, %v703_v15, %v1509_v24 }
  0xf5   :  { %v717_v26 = vrot.slane %v674_v62, 4  ;;  %v678_v45 = vperm.slane %v670_v2, %v1322_v47  ;;  %956 = vmatpush.msra.mxu0 %v893_v17  ;;  %v937_v15 = vld [vmem:[#allocation7 + $0x1b0] sm:$0xff]  ;;  %1011 = vmatpush.msra.mxu2 %v916_v13 }
  0xf6   :  { %1029 = vmatpush.msra.mxu3 %v937_v15  ;;  %v909_v15 = vld [vmem:[#allocation7 + $0xd0] sm:$0xff] }
  0xf7   :  { %957 = vmatpush.msra.mxu0 %v892_v53  ;;  %1012 = vmatpush.msra.mxu2 %v915_v30 }
  0xf9   :  { %v1481_v32 = vpop.permute.xlu1 %233 }
  0xfa   :  { %v419_v19 = vrot.slane %v1481_v32, 4 }
 0x101   :  { %v1484_v36 = vpop.permute.xlu2 %220  ;;  %v260_v16 = vpop.permute.xlu1 %259 }
 0x102   :  { %v445_v25 = vrot.slane %v260_v16, 4  ;;  %v444_v43 = vsel %vm307_vm3, %v443_v61, %v260_v16  ;;  %v433_v0 = vrot.slane %v1484_v36, 4  ;;  %v432_v16 = vsel %vm307_vm3, %v431_v40, %v1484_v36  ;;  %v913_v36 = vld [vmem:[#allocation7 + $0xf0] sm:$0xff] }
 0x103   :  { %975 = vmatpush.msra.mxu1 %v913_v36 }
 0x104   :  { %v446_v3 = vsel %vm307_vm3, %v1470_v35, %v445_v25  ;;  %v491_v35 = vrot.slane %v1505_v54, 4  ;;  %v438_v25 = vperm.slane %v432_v16, %v1322_v47  ;;  %v932_v16 = vld [vmem:[#allocation7 + $0x188] sm:$0xff] }
 0x105   :  { %v1562_v29 = vperm.slane %v446_v3, %v1322_v47 }
 0x111   :  { %v279_v12 = vpop.permute.xlu2 %278 }
 0x112   :  { %v680_v22 = vsel %vm307_vm3, %v679_v5, %v279_v12  ;;  %v681_v23 = vrot.slane %v279_v12, 4  ;;  %v891_v12 = vld [vmem:[#allocation7 + $0x40] sm:$0xff] }
 0x113   :  { %v686_v28 = vperm.slane %v680_v22, %v1322_v47  ;;  %v710_v22 = vperm.slane %v704_v41, %v1335_v4  ;;  %958 = vmatpush.msra.mxu0 %v891_v12 }
 0x114   :  { %v682_v31 = vsel %vm307_vm3, %v1468_v18, %v681_v23  ;;  %v1526_v18 = vperm.slane %v458_v50, %v1322_v47 }
 0x115   :  { %v1521_v38 = vperm.slane %v682_v31, %v1322_v47  ;;  %v715_v39 = vrot.slane %v686_v28, 4  ;;  %v718_v42 = vsel %vm307_vm3, %v686_v28, %v717_v26  ;;  %v729_v26 = vrot.slane %v678_v45, 4  ;;  %959 = vmatpush.msra.mxu0 %v890_v55 }
 0x116   :  { %v1530_v9 = vperm.slane %v718_v42, %v1335_v4  ;;  %v434_v28 = vsel %vm307_vm3, %v1472_v20, %v433_v0  ;;  %v503_v2 = vrot.slane %v1526_v18, 4  ;;  %v705_v20 = vrot.slane %v1509_v24, 4 }
 0x117   :  { %v727_v46 = vrot.slane %v1521_v38, 4  ;;  %v716_v48 = vsel %vm307_vm3, %v715_v39, %v674_v62  ;;  %v1544_v62 = vperm.slane %v444_v43, %v1322_v47  ;;  %v745_v39 = vrot.slane %v702_v60, 4  ;;  %v912_v43 = vld [vmem:[#allocation7 + $0xe8] sm:$0xff]  ;;  %960 = vmatpush.msra.mxu0 %v889_v33  ;;  %v931_v33 = vld [vmem:[#allocation7 + $0x180] sm:$0xff] }
 0x118   :  { %v722_v57 = vperm.slane %v716_v48, %v1335_v4  ;;  %v743_v51 = vrot.slane %v1530_v9, 4  ;;  %v730_v42 = vsel %vm307_vm3, %v1521_v38, %v729_v26  ;;  %v1576_v17 = vperm.slane %v434_v28, %v1322_v47  ;;  %976 = vmatpush.msra.mxu1 %v912_v43  ;;  %v885_v26 = vld [vmem:[#allocation7 + $0x10] sm:$0xff] }
 0x119   :  { %v728_v5 = vsel %vm307_vm3, %v727_v46, %v678_v45  ;;  %v492_v31 = vsel %vm307_vm3, %v491_v35, %v1544_v62  ;;  %v749_v40 = vrot.slane %v710_v22, 4  ;;  %v746_v24 = vsel %vm307_vm3, %v1530_v9, %v745_v39  ;;  %v888_v46 = vld [vmem:[#allocation7 + $0x28] sm:$0xff] }
 0x11a   :  { %v739_v7 = vrot.slane %v722_v57, 4  ;;  %v742_v1 = vsel %vm307_vm3, %v722_v57, %v741_v58  ;;  %v744_v10 = vsel %vm307_vm3, %v743_v51, %v702_v60  ;;  %v734_v61 = vperm.slane %v728_v5, %v1335_v4  ;;  %v911_v58 = vld [vmem:[#allocation7 + $0xe0] sm:$0xff]  ;;  %v934_v60 = vld [vmem:[#allocation7 + $0x198] sm:$0xff]  ;;  %961 = vmatpush.msra.mxu0 %v888_v46 }
 0x11b   :  { %807 = vrot.lane.b32.xlu1 %v742_v1, %s1204_s5  ;;  %815 = vrot.lane.b32.xlu2 %v744_v10, %s1203_s30  ;;  %v498_v45 = vperm.slane %v492_v31, %v1335_v4  ;;  %v504_v38 = vsel %vm307_vm3, %v503_v2, %v1562_v29  ;;  %v1586_v57 = vperm.slane %v730_v42, %v1335_v4  ;;  %v467_v9 = vrot.slane %v438_v25, 4  ;;  %v887_v5 = vld [vmem:[#allocation7 + $0x20] sm:$0xff]  ;;  %v933_v10 = vld [vmem:[#allocation7 + $0x190] sm:$0xff]  ;;  %v908_v2 = vld [vmem:[#allocation7 + $0xc8] sm:$0xff] }
 0x11c   :  { %v747_v23 = vrot.slane %v734_v61, 4  ;;  %v1557_v50 = vsel %vm307_vm3, %v739_v7, %v698_v11  ;;  %v936_v11 = vld [vmem:[#allocation7 + $0x1a8] sm:$0xff]  ;;  %v750_v53 = vsel %vm307_vm3, %v734_v61, %v749_v40  ;;  %v493_v51 = vrot.slane %v1544_v62, 4  ;;  %977 = vmatpush.msra.mxu1 %v911_v58  ;;  %962 = vmatpush.msra.mxu0 %v887_v5  ;;  %v907_v40 = vld [vmem:[#allocation7 + $0xc0] sm:$0xff] }
 0x11d   :  { %1030 = vmatpush.msra.mxu3 %v936_v11  ;;  %v706_v3 = vsel %vm307_vm3, %v1494_v49, %v705_v20  ;;  %v479_v7 = vrot.slane %v1576_v17, 4  ;;  %v1600_v12 = vperm.slane %v504_v38, %v1335_v4  ;;  %v886_v49 = vld [vmem:[#allocation7 + $0x18] sm:$0xff]  ;;  %v751_v13 = vrot.slane %v1586_v57, 4  ;;  %v884_v20 = vld [vmem:[#allocation7 + $0x8] sm:$0xff] }
 0x11e   :  { %v1568_v37 = vsel %vm307_vm3, %v747_v23, %v710_v22  ;;  %v714_v35 = vperm.slane %v706_v3, %v1335_v4  ;;  %978 = vmatpush.msra.mxu1 %v910_v6  ;;  %v494_v23 = vsel %vm307_vm3, %v1505_v54, %v493_v51  ;;  %963 = vmatpush.msra.mxu0 %v886_v49 }
 0x11f   :  { %1031 = vmatpush.msra.mxu3 %v935_v21  ;;  %v523_v54 = vrot.slane %v1600_v12, 4  ;;  %v502_v42 = vperm.slane %v494_v23, %v1335_v4  ;;  %v883_v21 = vld [vmem:[#allocation7] sm:$0xff] }
 0x120   :  { %979 = vmatpush.msra.mxu1 %v909_v15  ;;  %964 = vmatpush.msra.mxu0 %v885_v26 }
 0x121   :  { %v208_v44 = vpop.permute.xlu2 %207  ;;  %1032 = vmatpush.msra.mxu3 %v934_v60 }
 0x122   :  { %v420_v48 = vsel %vm307_vm3, %v419_v19, %v208_v44  ;;  %v421_v41 = vrot.slane %v208_v44, 4  ;;  %980 = vmatpush.msra.mxu1 %v908_v2  ;;  %965 = vmatpush.msra.mxu0 %v884_v20 }
 0x123   :  { %v426_v0 = vperm.slane %v420_v48, %v1322_v47  ;;  %823 = vrot.lane.b32.xlu1 %v746_v24, %s1202_s2  ;;  %831 = vrot.lane.b32.xlu2 %v750_v53, %s1204_s5  ;;  %v519_v53 = vrot.slane %v502_v42, 4 }
 0x124   :  { %v422_v1 = vsel %vm307_vm3, %v1481_v32, %v421_v41  ;;  %v515_v32 = vrot.slane %v498_v45, 4  ;;  %1033 = vmatpush.msra.mxu3 %v933_v10  ;;  %981 = vmatpush.msra.mxu1 %v907_v40  ;;  %v753_v41 = vrot.slane %v714_v35, 4 }
 0x125   :  { %v430_v62 = vperm.slane %v422_v1, %v1322_v47  ;;  %v468_v61 = vsel %vm307_vm3, %v467_v9, %v426_v0  ;;  %v469_v8 = vrot.slane %v426_v0, 4  ;;  %v505_v47 = vrot.slane %v1562_v29, 4  ;;  %966 = vmatpush.msra.mxu0 %v883_v21  ;;  %v904_v9 = vld [vmem:[#allocation7 + $0xa8] sm:$0xff]  ;;  %v901_v1 = vld [vmem:[#allocation7 + $0x90] sm:$0xff] }
 0x126   :  { %v474_v14 = vperm.slane %v468_v61, %v1335_v4  ;;  %1034 = vmatpush.msra.mxu3 %v932_v16  ;;  %v754_v51 = vsel %vm307_vm3, %v1586_v57, %v753_v41 }
 0x127   :  { %v470_v22 = vsel %vm307_vm3, %v438_v25, %v469_v8  ;;  %v480_v55 = vsel %vm307_vm3, %v479_v7, %v430_v62  ;;  %v481_v29 = vrot.slane %v430_v62, 4  ;;  %v752_v25 = vsel %vm307_vm3, %v751_v13, %v714_v35  ;;  %v900_v62 = vld [vmem:[#allocation7 + $0x88] sm:$0xff]  ;;  %v899_v35 = vld [vmem:[#allocation7 + $0x80] sm:$0xff] }
 0x128   :  { %v517_v28 = vrot.slane %v474_v14, 4  ;;  %v478_v30 = vperm.slane %v470_v22, %v1335_v4  ;;  %v486_v36 = vperm.slane %v480_v55, %v1335_v4  ;;  %v1613_v31 = vsel %vm307_vm3, %v515_v32, %v474_v14  ;;  %1035 = vmatpush.msra.mxu3 %v931_v33 }
 0x129   :  { %v1615_v11 = vpop.permute.xlu2 %773  ;;  %v506_v43 = vsel %vm307_vm3, %v1526_v18, %v505_v47  ;;  %v482_v46 = vsel %vm307_vm3, %v1576_v17, %v481_v29  ;;  %v905_v18 = vld [vmem:[#allocation7 + $0xb0] sm:$0xff]  ;;  %v903_v17 = vld [vmem:[#allocation7 + $0xa0] sm:$0xff] }
 0x12a   :  { %v518_v39 = vsel %vm307_vm3, %v498_v45, %v517_v28  ;;  %v521_v19 = vrot.slane %v478_v30, 4  ;;  %v1626_v44 = vsel %vm307_vm3, %v523_v54, %v486_v36  ;;  %v906_v45 = vld [vmem:[#allocation7 + $0xb8] sm:$0xff]  ;;  %v514_v48 = vperm.slane %v506_v43, %v1335_v4 }
 0x12b   :  { %839 = vrot.lane.b32.xlu1 %v752_v25, %s1203_s30  ;;  %759 = vrot.lane.b32.xlu0 %v518_v39, %s1204_s5  ;;  %v490_v58 = vperm.slane %v482_v46, %v1335_v4  ;;  %v520_v0 = vsel %vm307_vm3, %v519_v53, %v478_v30  ;;  %v902_v4 = vld [vmem:[#allocation7 + $0x98] sm:$0xff]  ;;  %v525_v7 = vrot.slane %v486_v36, 4 }
 0x12c   :  { %v522_v24 = vsel %vm307_vm3, %v502_v42, %v521_v19  ;;  %982 = vmatpush.msra.mxu1 %v906_v45  ;;  %v527_v3 = vrot.slane %v514_v48, 4 }
 0x12d   :  { %v806_v38 = vpop.permute.xlu1 %805  ;;  %775 = vrot.lane.b32.xlu2 %v522_v24, %s1202_s2  ;;  %v526_v8 = vsel %vm307_vm3, %v1600_v12, %v525_v7  ;;  %v529_v32 = vrot.slane %v490_v58, 4 }
 0x12e   :  { %983 = vmatpush.msra.mxu1 %v905_v18  ;;  %v528_v5 = vsel %vm307_vm3, %v527_v3, %v490_v58  ;;  %v863_v57 = vsel %vm89_vm0, %v1380_v52, %v806_v38 }
 0x12f   :  { %v530_v12 = vsel %vm307_vm3, %v514_v48, %v529_v32 }
 0x130   :  { %984 = vmatpush.msra.mxu1 %v904_v9 }
 0x131   :  { %v790_v60 = vpop.permute.xlu2 %789 }
 0x132   :  { %985 = vmatpush.msra.mxu1 %v903_v17 }
 0x133   :  { %847 = vrot.lane.b32.xlu1 %v754_v51, %s1202_s2  ;;  %767 = vrot.lane.b32.xlu0 %v520_v0, %s1203_s30 }
 0x134   :  { %986 = vmatpush.msra.mxu1 %v902_v4 }
 0x135   :  { %v822_v6 = vpop.permute.xlu1 %821  ;;  %791 = vrot.lane.b32.xlu2 %v528_v5, %s1203_s30  ;;  %v1094_v5 = vld [vmem:[%s1699_s3] ss:$0 sm:$0xff]  ;;  %s1051_s3 = sshll.u32 %s1700_s4, 4  ;;  %s1052_s3 = int_to_ptr.hbm [resolvable:$true] %s1051_s3 }
 0x136   :  { %987 = vmatpush.msra.mxu1 %v901_v1 }
 0x138   :  { %988 = vmatpush.msra.mxu1 %v900_v62 }
 0x139   :  { %v814_v10 = vpop.permute.xlu2 %813 }
 0x13a   :  { %v865_v61 = vsel %vm92_vm1, %v863_v57, %v814_v10  ;;  %989 = vmatpush.msra.mxu1 %v899_v35 }
 0x13b   :  { %783 = vrot.lane.b32.xlu0 %v526_v8, %s1204_s5  ;;  %v867_v49 = vsel %vm95_vm2, %v865_v61, %v822_v6 }
 0x13c   :  { %v877_v13 = vmul.f32 %v867_v49, %v1305_v27 }
 0x13d   :  { %v838_v14 = vpop.permute.xlu1 %837 }
 0x13e   :  { %1013 = vmatmul.f32.vlgmr.msra.gmra.mxu2 %v877_v13 }
 0x13f   :  { %v758_v52 = vpop.permute.xlu0 %757 }
 0x140   :  { %v851_v55 = vsel %vm89_vm0, %v1443_v59, %v758_v52 }
 0x141   :  { %v830_v15 = vpop.permute.xlu2 %829 }
 0x142   :  { %v869_v16 = vsel %vm89_vm0, %v1398_v63, %v830_v15 }
 0x143   :  { %799 = vrot.lane.b32.xlu0 %v530_v12, %s1202_s2  ;;  %v871_v22 = vsel %vm92_vm1, %v869_v16, %v838_v14 }
 0x145   :  { %v846_v47 = vpop.permute.xlu1 %845 }
 0x146   :  { %v873_v23 = vsel %vm95_vm2, %v871_v22, %v846_v47 }
 0x147   :  { %v766_v26 = vpop.permute.xlu0 %765  ;;  %v878_v28 = vmul.f32 %v873_v23, %v1305_v27 }
 0x148   :  { %v853_v30 = vsel %vm92_vm1, %v851_v55, %v766_v26 }
 0x149   :  { %1036 = vmatmul.f32.vlgmr.msra.gmra.mxu3 %v878_v28  ;;  %v855_v63 = vsel %vm95_vm2, %v853_v30, %v1615_v11 }
 0x14a   :  { %v875_v36 = vmul.f32 %v855_v63, %v1305_v27 }
 0x14c   :  { %967 = vmatmul.f32.vlgmr.msra.gmra.mxu0 %v875_v36 }
 0x14f   :  { %v782_v2 = vpop.permute.xlu0 %781 }
 0x150   :  { %v857_v29 = vsel %vm89_vm0, %v1438_v56, %v782_v2 }
 0x151   :  { %v859_v54 = vsel %vm92_vm1, %v857_v29, %v790_v60 }
 0x157   :  { %v798_v33 = vpop.permute.xlu0 %797 }
 0x158   :  { %v861_v59 = vsel %vm95_vm2, %v859_v54, %v798_v33 }
 0x159   :  { %v876_v20 = vmul.f32 %v861_v59, %v1305_v27 }
 0x15b   :  { %990 = vmatmul.f32.vlgmr.msra.gmra.mxu1 %v876_v20 }
 0x175   :  { %v816_v11 = vpop.permute.xlu2 %815 }
 0x17d   :  { %v832_v24 = vpop.permute.xlu2 %831 }
 0x17e   :  { %v870_v27 = vsel %vm89_vm0, %v1568_v37, %v832_v24 }
 0x187   :  { %v776_v48 = vpop.permute.xlu2 %775 }
 0x18d   :  { %v808_v25 = vpop.permute.xlu1 %807 }
 0x18e   :  { %v864_v39 = vsel %vm89_vm0, %v1557_v50, %v808_v25 }
 0x18f   :  { %v866_v19 = vsel %vm92_vm1, %v864_v39, %v816_v11 }
 0x195   :  { %v824_v42 = vpop.permute.xlu1 %823 }
 0x196   :  { %v868_v40 = vsel %vm95_vm2, %v866_v19, %v824_v42 }
 0x197   :  { %v881_v56 = vmul.f32 %v868_v40, %v1312_v34 }
 0x199   :  { %1016 = vmatmul.f32.gmra.mxu2 %v881_v56 }
 0x19d   :  { %v840_v43 = vpop.permute.xlu1 %839  ;;  %v760_v21 = vpop.permute.xlu0 %759 }
 0x19e   :  { %v872_v45 = vsel %vm92_vm1, %v870_v27, %v840_v43  ;;  %v852_v50 = vsel %vm89_vm0, %v1613_v31, %v760_v21  ;;  %v792_v31 = vpop.permute.xlu2 %791 }
 0x1a5   :  { %v848_v38 = vpop.permute.xlu1 %847  ;;  %v768_v46 = vpop.permute.xlu0 %767 }
 0x1a6   :  { %v874_v18 = vsel %vm95_vm2, %v872_v45, %v848_v38  ;;  %v854_v41 = vsel %vm92_vm1, %v852_v50, %v768_v46 }
 0x1a7   :  { %v882_v53 = vmul.f32 %v874_v18, %v1312_v34  ;;  %v856_v58 = vsel %vm95_vm2, %v854_v41, %v776_v48 }
 0x1a8   :  { %v879_v60 = vmul.f32 %v856_v58, %v1312_v34 }
 0x1a9   :  { %1039 = vmatmul.f32.gmra.mxu3 %v882_v53 }
 0x1aa   :  { %970 = vmatmul.f32.gmra.mxu0 %v879_v60 }
 0x1ad   :  { %v784_v37 = vpop.permute.xlu0 %783 }
 0x1ae   :  { %v858_v9 = vsel %vm89_vm0, %v1626_v44, %v784_v37 }
 0x1af   :  { %v860_v51 = vsel %vm92_vm1, %v858_v9, %v792_v31 }
 0x1b5   :  { %v800_v0 = vpop.permute.xlu0 %799 }
 0x1b6   :  { %v862_v3 = vsel %vm95_vm2, %v860_v51, %v800_v0 }
 0x1b7   :  { %v880_v17 = vmul.f32 %v862_v3, %v1312_v34 }
 0x1b9   :  { %993 = vmatmul.f32.gmra.mxu1 %v880_v17 }
 0x1c1   :  { %v1014_v57 = vpop.f32.mrf.mxu2 }
 0x1c9   :  { %v968_v6 = vpop.f32.mrf.mxu0 }
 0x1ca   :  { %v969_v4 = vadd.f32 %v1094_v5, %v968_v6 }
 0x1cc   :  { %v1037_v44 = vpop.f32.mrf.mxu3 }
 0x1d8   :  { %v991_v7 = vpop.f32.mrf.mxu1 }
 0x1d9   :  { %v992_v1 = vadd.f32 %v991_v7, %v969_v4 }
 0x1db   :  { %v1015_v10 = vadd.f32 %v1014_v57, %v992_v1 }
 0x1dd   :  { %v1038_v62 = vadd.f32 %v1037_v44, %v1015_v10 }
 0x1df   :  { %1043 = vst [vmem:[#allocation8] sm:$0xff] %v1038_v62 }
 0x21c   :  { %v1017_v13 = vpop.f32.mrf.mxu2 }
 0x227   :  { %v971_v61 = vpop.f32.mrf.mxu0 }
 0x228   :  { %v972_v8 = vadd.f32 %v1094_v5, %v971_v61 }
 0x22c   :  { %v1040_v14 = vpop.f32.mrf.mxu3 }
 0x236   :  { %v994_v49 = vpop.f32.mrf.mxu1 }
 0x237   :  { %v995_v35 = vadd.f32 %v994_v49, %v972_v8 }
 0x239   :  { %v1018_v34 = vadd.f32 %v1017_v13, %v995_v35 }
 0x23b   :  { %v1041_v32 = vadd.f32 %v1040_v14, %v1018_v34 }
 0x23d   :  { %1044 = vst [vmem:[#allocation8 + $0x8] sm:$0xff] %v1041_v32 }
 0x23e   :  { %1057 = dma.vmem_to_hbm [thread:$0]  %s1050_s9, 256, %s1052_s3, [#allocation4], %s1198_s23, %s1198_s23, %s1199_s24  }
 0x23f   :  { %1195 = dma.done.wait [#allocation4], 256  }
 0x240   :  { %1196 = vsyncadd [#allocation4], 4294967040 }
 0x241   :  { %1062 = vsyncpa [#allocation3], 1 }
 0x242   :  { %1063 = vsyncpa [#allocation6], 1 }
 0x243   :  { %1064 = vsyncpa [#allocation4], 1 }

</bundles_post_ra>
